<compile_context>
chip_gen: v7x
topology: tpu7x:2x2x1
jax: 0.10.0
libtpu: 0.0.40
codegen_flags: <defaults>
</compile_context>

<pallas_src>
import functools

import jax
import jax.numpy as jnp
from jax.experimental import pallas as pl
from jax.experimental.pallas import tpu as pltpu

LANES = 128
SUBLANES = 8
MAX_BLOCK_ROWS = 1024      # (1024, 128) f32 block = 512 KiB per input per step
NUM_PARALLEL = 2           # leading "parallel" grid axis (v7x has 2 TCs)


def _bce_kernel(x_ref, t_ref, o_ref, *, blocks_per_p, n_blocks, valid_in_last):
    p = pl.program_id(0)
    j = pl.program_id(1)
    b = p * blocks_per_p + j            # global block index (may be >= n_blocks)

    @pl.when(j == 0)
    def _():
        o_ref[...] = jnp.zeros_like(o_ref)

    x = x_ref[...].astype(jnp.float32)
    t = t_ref[...].astype(jnp.float32)
    # Numerically stable BCE-with-logits (same formula PyTorch uses).
    loss = jnp.maximum(x, 0.0) - x * t + jnp.log1p(jnp.exp(-jnp.abs(x)))

    def partial_sum(blk):
        # (block_rows, 128) -> (block_rows//8, 8, 128) -> add over the leading
        # axis: pure vreg-wise VPU adds; no per-step cross-lane/sublane (XLU)
        # reduction.  Final scalar reduce happens once in the wrapper.
        return blk.reshape(-1, SUBLANES, LANES).sum(axis=0)

    # Steady state: full interior blocks, no masking at all.
    @pl.when(b < n_blocks - 1)
    def _():
        o_ref[...] += partial_sum(loss)

    # Globally-last block: mask the padded / out-of-range tail using
    # block-relative indices (<= block_rows*128, so int32 never overflows).
    @pl.when(b == n_blocks - 1)
    def _():
        row = jax.lax.broadcasted_iota(jnp.int32, loss.shape, 0)
        col = jax.lax.broadcasted_iota(jnp.int32, loss.shape, 1)
        rel = row * LANES + col
        o_ref[...] += partial_sum(jnp.where(rel < valid_in_last, loss, 0.0))

    # Grid points with b >= n_blocks (only when n_blocks % P != 0) fall through
    # both branches and contribute nothing.


def bce_with_logits_loss_2d(logits, targets):
    """Pallas equivalent of BCEWithLogitsLoss2d.forward (scalar mean loss)."""
    assert logits.shape == targets.shape
    n = logits.size

    # Keep native dtypes (e.g. bf16 logits/targets halve HBM traffic for this
    # bandwidth-bound kernel); the cast to f32 happens inside the kernel.
    x = logits.reshape(-1)
    t = targets.reshape(-1)

    tile = SUBLANES * LANES  # 1024
    if n % tile != 0:
        # Only hit for awkward sizes: pad to an (8,128)-aligned length so the
        # lane dim is 128-wide and rows is sublane-aligned.  Padded elements
        # are masked out in the kernel (no ln(2) correction needed).
        pad = tile - (n % tile)
        x = jnp.pad(x, (0, pad))
        t = jnp.pad(t, (0, pad))

    n_padded = x.size
    rows = n_padded // LANES                         # multiple of 8
    block_rows = min(MAX_BLOCK_ROWS, rows)           # multiple of 8, <= rows
    n_blocks = pl.cdiv(rows, block_rows)
    num_parallel = min(NUM_PARALLEL, n_blocks)
    blocks_per_p = pl.cdiv(n_blocks, num_parallel)
    # Number of *valid* (original) elements in the globally-last block; a
    # trace-time Python int, so no in-kernel 64-bit index arithmetic needed.
    valid_in_last = n - (n_blocks - 1) * block_rows * LANES

    x2 = x.reshape(rows, LANES)
    t2 = t.reshape(rows, LANES)

    def in_map(p_idx, j_idx):
        # Clamp so trailing grid points (when n_blocks % P != 0) re-read the
        # last block; the kernel skips their contribution.
        return (jnp.minimum(p_idx * blocks_per_p + j_idx, n_blocks - 1), 0)

    kernel = functools.partial(
        _bce_kernel,
        blocks_per_p=blocks_per_p,
        n_blocks=n_blocks,
        valid_in_last=valid_in_last,
    )

    partial = pl.pallas_call(
        kernel,
        out_shape=jax.ShapeDtypeStruct(
            (num_parallel * SUBLANES, LANES), jnp.float32
        ),
        grid_spec=pltpu.PrefetchScalarGridSpec(
            num_scalar_prefetch=0,
            grid=(num_parallel, blocks_per_p),
            in_specs=[
                pl.BlockSpec((block_rows, LANES), in_map),
                pl.BlockSpec((block_rows, LANES), in_map),
            ],
            out_specs=pl.BlockSpec(
                (SUBLANES, LANES), lambda p_idx, j_idx: (p_idx, 0)
            ),
        ),
        compiler_params=pltpu.CompilerParams(
            dimension_semantics=("parallel", "arbitrary"),
        ),
    )(x2, t2)

    # Tiny final reduction (at most 2*8*128 f32 values) + mean in plain JAX.
    return jnp.sum(partial) / jnp.float32(n)


def _reference(logits, targets):
    x = logits.reshape(-1).astype(jnp.float32)
    t = targets.reshape(-1).astype(jnp.float32)
    loss = jnp.maximum(x, 0.0) - x * t + jnp.log1p(jnp.exp(-jnp.abs(x)))
    return jnp.mean(loss)


if __name__ == "__main__":
    key = jax.random.PRNGKey(0)
    k1, k2 = jax.random.split(key)
    # NCHW, consistent with the PyTorch module's segmentation use-case.
    logits = jax.random.normal(k1, (2, 4, 16, 16), dtype=jnp.float32)
    targets = (jax.random.uniform(k2, (2, 4, 16, 16)) > 0.5).astype(jnp.float32)

    out = bce_with_logits_loss_2d(logits, targets)
    jax.block_until_ready(out)

    ref = _reference(logits, targets)
    assert jnp.allclose(out, ref, rtol=1e-5, atol=1e-5), (out, ref)
    print("KERNEL_OK")
</pallas_src>

<mosaic_0001>
module attributes {stable_mosaic.version = 11 : i64} {
  func.func @_bce_kernel(%arg0: i32, %arg1: i32, %arg2: memref<16x128xf32, #tpu.memory_space<vmem>>, %arg3: memref<16x128xf32, #tpu.memory_space<vmem>>, %arg4: memref<8x128xf32, #tpu.memory_space<vmem>>) attributes {dimension_semantics = [#tpu.dimension_semantics<parallel>, #tpu.dimension_semantics<arbitrary>], iteration_bounds = array<i64: 1, 1>, scalar_prefetch = 0 : i64, scratch_operands = 0 : i64, tpu.core_type = #tpu.core_type<tc>, window_params = [{transform_indices = @transform_0, window_bounds = array<i64: 16, 128>}, {transform_indices = @transform_1, window_bounds = array<i64: 16, 128>}, {transform_indices = @transform_2, window_bounds = array<i64: 8, 128>}]} {
    %c1_i32 = arith.constant 1 : i32
    %0 = arith.muli %arg0, %c1_i32 : i32
    %1 = arith.addi %0, %arg1 : i32
    %c0_i32 = arith.constant 0 : i32
    %2 = arith.cmpi eq, %arg1, %c0_i32 : i32
    %3 = arith.extui %2 : i1 to i32
    %c0_i32_0 = arith.constant 0 : i32
    %4 = arith.cmpi ne, %3, %c0_i32_0 : i32
    scf.if %4 {
      %cst_9 = arith.constant 0.000000e+00 : f32
      %23 = vector.broadcast %cst_9 : f32 to vector<8x128xf32>
      %c0_10 = arith.constant 0 : index
      %c0_11 = arith.constant 0 : index
      %24 = vector.load %arg4[%c0_10, %c0_11] : memref<8x128xf32, #tpu.memory_space<vmem>>, vector<8x128xf32>
      tpu.vector_store %arg4[%c0_10, %c0_11], %23 {strides = array<i32>} : memref<8x128xf32, #tpu.memory_space<vmem>>, vector<8x128xf32>,
    } else {
    }
    %c0 = arith.constant 0 : index
    %c0_1 = arith.constant 0 : index
    %5 = vector.load %arg2[%c0, %c0_1] : memref<16x128xf32, #tpu.memory_space<vmem>>, vector<16x128xf32>
    %c0_2 = arith.constant 0 : index
    %c0_3 = arith.constant 0 : index
    %6 = vector.load %arg3[%c0_2, %c0_3] : memref<16x128xf32, #tpu.memory_space<vmem>>, vector<16x128xf32>
    %cst = arith.constant 0.000000e+00 : f32
    %7 = vector.broadcast %cst : f32 to vector<16x128xf32>
    %8 = arith.maximumf %5, %7 : vector<16x128xf32>
    %9 = arith.mulf %5, %6 : vector<16x128xf32>
    %10 = arith.subf %8, %9 : vector<16x128xf32>
    %11 = math.absf %5 : vector<16x128xf32>
    %cst_4 = arith.constant 0.000000e+00 : f32
    %12 = vector.broadcast %cst_4 : f32 to vector<16x128xf32>
    %13 = arith.subf %12, %11 : vector<16x128xf32>
    %14 = math.exp %13 : vector<16x128xf32>
    %15 = math.log1p %14 : vector<16x128xf32>
    %16 = arith.addf %10, %15 : vector<16x128xf32>
    %c0_i32_5 = arith.constant 0 : i32
    %17 = arith.cmpi slt, %1, %c0_i32_5 : i32
    %18 = arith.extui %17 : i1 to i32
    %c0_i32_6 = arith.constant 0 : i32
    %19 = arith.cmpi ne, %18, %c0_i32_6 : i32
    scf.if %19 {
      %c0_9 = arith.constant 0 : index
      %c0_10 = arith.constant 0 : index
      %23 = vector.load %arg4[%c0_9, %c0_10] : memref<8x128xf32, #tpu.memory_space<vmem>>, vector<8x128xf32>
      %24 = vector.shape_cast %16 : vector<16x128xf32> to vector<2x8x128xf32>
      %cst_11 = arith.constant dense<0.000000e+00> : vector<8x128xf32>
      %25 = vector.multi_reduction <add>, %24, %cst_11 [0] : vector<2x8x128xf32> to vector<8x128xf32>
      %26 = arith.addf %23, %25 : vector<8x128xf32>
      %c0_12 = arith.constant 0 : index
      %c0_13 = arith.constant 0 : index
      %27 = vector.load %arg4[%c0_12, %c0_13] : memref<8x128xf32, #tpu.memory_space<vmem>>, vector<8x128xf32>
      tpu.vector_store %arg4[%c0_12, %c0_13], %26 {strides = array<i32>} : memref<8x128xf32, #tpu.memory_space<vmem>>, vector<8x128xf32>,
    } else {
    }
    %c0_i32_7 = arith.constant 0 : i32
    %20 = arith.cmpi eq, %1, %c0_i32_7 : i32
    %21 = arith.extui %20 : i1 to i32
    %c0_i32_8 = arith.constant 0 : i32
    %22 = arith.cmpi ne, %21, %c0_i32_8 : i32
    scf.if %22 {
      %23 = tpu.iota {dimensions = array<i32: 0>} : vector<16x128xi32>
      %24 = tpu.iota {dimensions = array<i32: 1>} : vector<16x128xi32>
      %c128_i32 = arith.constant 128 : i32
      %25 = vector.broadcast %c128_i32 : i32 to vector<16x128xi32>
      %26 = arith.muli %23, %25 : vector<16x128xi32>
      %27 = arith.addi %26, %24 : vector<16x128xi32>
      %c0_9 = arith.constant 0 : index
      %c0_10 = arith.constant 0 : index
      %28 = vector.load %arg4[%c0_9, %c0_10] : memref<8x128xf32, #tpu.memory_space<vmem>>, vector<8x128xf32>
      %c2048_i32 = arith.constant 2048 : i32
      %29 = vector.broadcast %c2048_i32 : i32 to vector<16x128xi32>
      %30 = arith.cmpi slt, %27, %29 : vector<16x128xi32>
      %cst_11 = arith.constant 0.000000e+00 : f32
      %31 = vector.broadcast %cst_11 : f32 to vector<16x128xf32>
      %32 = arith.select %30, %16, %31 : vector<16x128xi1>, vector<16x128xf32>
      %33 = vector.shape_cast %32 : vector<16x128xf32> to vector<2x8x128xf32>
      %cst_12 = arith.constant dense<0.000000e+00> : vector<8x128xf32>
      %34 = vector.multi_reduction <add>, %33, %cst_12 [0] : vector<2x8x128xf32> to vector<8x128xf32>
      %35 = arith.addf %28, %34 : vector<8x128xf32>
      %c0_13 = arith.constant 0 : index
      %c0_14 = arith.constant 0 : index
      %36 = vector.load %arg4[%c0_13, %c0_14] : memref<8x128xf32, #tpu.memory_space<vmem>>, vector<8x128xf32>
      tpu.vector_store %arg4[%c0_13, %c0_14], %35 {strides = array<i32>} : memref<8x128xf32, #tpu.memory_space<vmem>>, vector<8x128xf32>,
    } else {
    }
    return
  }
  func.func @transform_0(%arg0: i32, %arg1: i32) -> (i32, i32) {
    %c1_i32 = arith.constant 1 : i32
    %0 = arith.muli %arg0, %c1_i32 : i32
    %1 = arith.addi %0, %arg1 : i32
    %c0_i32 = arith.constant 0 : i32
    %2 = arith.minsi %1, %c0_i32 : i32
    %c0_i32_0 = arith.constant 0 : i32
    %c0_i32_1 = arith.constant 0 : i32
    return %2, %c0_i32_0 : i32, i32
  }
  func.func @transform_1(%arg0: i32, %arg1: i32) -> (i32, i32) {
    %c1_i32 = arith.constant 1 : i32
    %0 = arith.muli %arg0, %c1_i32 : i32
    %1 = arith.addi %0, %arg1 : i32
    %c0_i32 = arith.constant 0 : i32
    %2 = arith.minsi %1, %c0_i32 : i32
    %c0_i32_0 = arith.constant 0 : i32
    %c0_i32_1 = arith.constant 0 : i32
    return %2, %c0_i32_0 : i32, i32
  }
  func.func @transform_2(%arg0: i32, %arg1: i32) -> (i32, i32) {
    %c0_i32 = arith.constant 0 : i32
    %c0_i32_0 = arith.constant 0 : i32
    return %arg0, %c0_i32 : i32, i32
  }
}

</mosaic_0001>

<bundles_post_ra>
// kernel: tpu_custom_call.1
= control target key start
LH: loop header
LB: loop body
LE: loop exit
PB: predicated region body
PF: predicated region fallthrough
CT: control target
= control target key end

     0   :  { %7 = vsyncpa [#allocation3], 0  ;;  %s295_s0 = inlined_call_operand.hbm [shape: f32[16,128], index: 0, kind: input, shape index: {}]   ;;  %s296_s1 = inlined_call_operand.hbm [shape: f32[16,128], index: 1, kind: input, shape index: {}]   ;;  %s297_s2 = inlined_call_operand.hbm [shape: f32[8,128], index: 2, kind: output, shape index: {}]  }
   0x1   :  { %8 = vsyncpa [#allocation6], 0 }
   0x2   :  { %9 = vsyncpa [#allocation4], 0  ;;  %s239_s9 = smov [#allocation2]   ;;  %s167_s13 = scalar_lea.hbm %s295_s0, 256 }
   0x3   :  { %s21_s10 = sshll.u32 %s239_s9, 4  ;;  %p168_p0 = scmp.ne.s32.totalorder %s295_s0, %s167_s13  ;;  %s22_s10 = int_to_ptr.vmem [resolvable:$true] %s21_s10 }
   0x4   :  { %p171_p1 = scmp.lt.u32.totalorder %s167_s13, %s295_s0 }
   0x6   :  { %p173_p2 = pnand %p171_p1, %p168_p0 }
   0x8   :  { %176 = shalt.err (!%p173_p2)
}
   0x9   :  { %s177_s18 = scalar_lea.vmem %s22_s10, 256  ;;  %p182_p4 = scmp.lt.s32.totalorder %s22_s10, %s22_s10 }
   0xa   :  { %p178_p3 = scmp.ne.s32.totalorder %s22_s10, %s177_s18  ;;  %p183_p5 = scmp.lt.s32.totalorder %s177_s18, %s177_s18 }
   0xc   :  { %p184_p6 = por %p183_p5, %p182_p4 }
   0xe   :  { %p185_p7 = pnand %p184_p6, %p178_p3 }
  0x10   :  { %188 = shalt.err (!%p185_p7)
}
  0x11   :  { %s240_s19 = smov 128   ;;  %s241_s20 = smov 8  }
  0x12   :  { %27 = dma.hbm_to_vmem [thread:$0]  %s295_s0, 256, %s22_s10, [#allocation3], %s240_s19, %s240_s19, %s241_s20  }
  0x13   :  { %s242_s23 = smov [#allocation5]   ;;  %s189_s27 = scalar_lea.hbm %s296_s1, 256 }
  0x14   :  { %s39_s24 = sshll.u32 %s242_s23, 4  ;;  %p190_p8 = scmp.ne.s32.totalorder %s296_s1, %s189_s27  ;;  %s40_s24 = int_to_ptr.vmem [resolvable:$true] %s39_s24 }
  0x15   :  { %p193_p9 = scmp.lt.u32.totalorder %s189_s27, %s296_s1 }
  0x17   :  { %p195_p10 = pnand %p193_p9, %p190_p8 }
  0x19   :  { %198 = shalt.err (!%p195_p10)
}
  0x1a   :  { %s199_s4 = scalar_lea.vmem %s40_s24, 256  ;;  %p204_p12 = scmp.lt.s32.totalorder %s40_s24, %s40_s24 }
  0x1b   :  { %p200_p11 = scmp.ne.s32.totalorder %s40_s24, %s199_s4  ;;  %p205_p13 = scmp.lt.s32.totalorder %s199_s4, %s199_s4 }
  0x1d   :  { %p206_p0 = por %p205_p13, %p204_p12 }
  0x1f   :  { %p207_p1 = pnand %p206_p0, %p200_p11 }
  0x21   :  { %210 = shalt.err (!%p207_p1)
}
  0x22   :  { %45 = dma.hbm_to_vmem [thread:$0]  %s296_s1, 256, %s40_s24, [#allocation6], %s240_s19, %s240_s19, %s241_s20  }
  0x23   :  { %233 = dma.done.wait [#allocation3], 256  }
  0x24   :  { %234 = vsyncadd [#allocation3], 4294967040 }
  0x25   :  { %235 = dma.done.wait [#allocation6], 256  }
  0x26   :  { %236 = vsyncadd [#allocation6], 4294967040  ;;  %v66_v0 = vld [vmem:[#allocation2] sm:$0xff]  ;;  %v67_v1 = vld [vmem:[#allocation2 + $0x8] sm:$0xff]  ;;  %v116_v8 = vlaneseq  ;;  %s243_s1 = smov [#allocation7]  }
  0x27   :  { %v76_v2 = vand.u32 2147483647, %v66_v0  ;;  %v77_v3 = vand.u32 2147483647, %v67_v1  ;;  %v68_v17 = vld [vmem:[#allocation5] sm:$0xff]  ;;  %v69_v18 = vld [vmem:[#allocation5 + $0x8] sm:$0xff] }
  0x28   :  { %v117_v10 = vshrl.u32 %v116_v8, 7  ;;  %v120_v20 = vand.u32 127, %v116_v8  ;;  %v70_v23 = vmax.f32 %v66_v0, 0.0  ;;  %v72_v24 = vmul.f32 %v68_v17, %v66_v0  ;;  %s139_s6 = sshll.u32 %s243_s1, 4  ;;  %s140_s6 = int_to_ptr.vmem [resolvable:$true] %s139_s6 }
  0x29   :  { %v78_v4 = vsub.f32 0.0, %v76_v2  ;;  %v79_v5 = vsub.f32 0.0, %v77_v3  ;;  %v71_v27 = vmax.f32 %v67_v1, 0.0  ;;  %v73_v28 = vmul.f32 %v69_v18, %v67_v1  ;;  %s211_s7 = scalar_lea.vmem %s140_s6, 128  ;;  %p216_p3 = scmp.lt.s32.totalorder %s140_s6, %s140_s6 }
  0x2a   :  { %v118_v15 = vadd.s32 8, %v117_v10  ;;  %v121_v21 = vmul.u32 128, %v117_v10  ;;  %v74_v33 = vsub.f32 %v70_v23, %v72_v24  ;;  %p212_p2 = scmp.ne.s32.totalorder %s140_s6, %s211_s7  ;;  %p217_p4 = scmp.lt.s32.totalorder %s211_s7, %s211_s7 }
  0x2b   :  { %v80_v6 = vmul.f32 1.442695, %v78_v4  ;;  %v82_v7 = vmul.f32 1.442695, %v79_v5  ;;  %v75_v37 = vsub.f32 %v71_v27, %v73_v28 }
  0x2c   :  { %v122_v22 = vmul.u32 128, %v118_v15  ;;  %v123_v31 = vadd.s32 %v121_v21, %v120_v20  ;;  %p218_p5 = por %p217_p4, %p216_p3 }
  0x2d   :  { %159 = vpow2.f32 %v80_v6 }
  0x2e   :  { %161 = vpow2.f32 %v82_v7  ;;  %v124_v35 = vadd.s32 %v122_v22, %v120_v20  ;;  %vm126_vm2 = vcmp.lt.s32.totalorder %v123_v31, 2048  ;;  %p219_p6 = pnand %p218_p5, %p212_p2 }
  0x30   :  { %vm127_vm3 = vcmp.lt.s32.totalorder %v124_v35, 2048 }
  0x37   :  { %v160_v9 = vpop.eup %159 }
  0x38   :  { %v162_v11 = vpop.eup %161  ;;  %v84_v12 = vadd.f32 1.0, %v160_v9  ;;  %v87_v14 = vmul.f32 -0.5, %v160_v9  ;;  %v90_v25 = vand.u32 2147483647, %v160_v9 }
  0x39   :  { %v93_v13 = vadd.f32 1.0, %v162_v11  ;;  %v96_v16 = vmul.f32 -0.5, %v162_v11  ;;  %v99_v29 = vand.u32 2147483647, %v162_v11 }
  0x3a   :  { %163 = vlog2.f32 %v84_v12  ;;  %v88_v19 = vadd.f32 1.0, %v87_v14  ;;  %vm91_vm0 = vcmp.lt.f32.partialorder %v90_v25, 0.0004427343 }
  0x3b   :  { %165 = vlog2.f32 %v93_v13  ;;  %v97_v26 = vadd.f32 1.0, %v96_v16  ;;  %vm100_vm1 = vcmp.lt.f32.partialorder %v99_v29, 0.0004427343 }
  0x3c   :  { %v89_v30 = vmul.f32 %v160_v9, %v88_v19 }
  0x3d   :  { %v98_v34 = vmul.f32 %v162_v11, %v97_v26 }
  0x44   :  { %v164_v32 = vpop.eup %163 }
  0x45   :  { %v166_v36 = vpop.eup %165  ;;  %v86_v38 = vmul.f32 0.6931472, %v164_v32 }
  0x46   :  { %v95_v39 = vmul.f32 0.6931472, %v166_v36 }
  0x47   :  { %v92_v40 = vsel %vm91_vm0, %v89_v30, %v86_v38 }
  0x48   :  { %v101_v41 = vsel %vm100_vm1, %v98_v34, %v95_v39  ;;  %v102_v42 = vadd.f32 %v92_v40, %v74_v33 }
  0x49   :  { %v103_v43 = vadd.f32 %v101_v41, %v75_v37 }
  0x4a   :  { %v128_v44 = vsel %vm126_vm2, %v102_v42, 0.0 }
  0x4b   :  { %v129_v45 = vsel %vm127_vm3, %v103_v43, 0.0 }
  0x4c   :  { %v130_v46 = vadd.f32 %v129_v45, %v128_v44 }
  0x4e   :  { %132 = vst [vmem:[#allocation7] sm:$0xff] %v130_v46 }
  0x4f   :  { %222 = shalt.err (!%p219_p6)
}
  0x50   :  { %s223_s10 = scalar_lea.hbm %s297_s2, 128 }
  0x51   :  { %p224_p7 = scmp.ne.s32.totalorder %s297_s2, %s223_s10  ;;  %p227_p8 = scmp.lt.u32.totalorder %s223_s10, %s297_s2 }
  0x53   :  { %p229_p9 = pnand %p227_p8, %p224_p7 }
  0x55   :  { %232 = shalt.err (!%p229_p9)
}
  0x56   :  { %142 = dma.vmem_to_hbm [thread:$0]  %s140_s6, 128, %s297_s2, [#allocation4]  }
  0x57   :  { %237 = dma.done.wait [#allocation4], 128  }
  0x58   :  { %238 = vsyncadd [#allocation4], 4294967168 }
  0x59   :  { %146 = vsyncpa [#allocation3], 1 }
  0x5a   :  { %147 = vsyncpa [#allocation6], 1 }
  0x5b   :  { %148 = vsyncpa [#allocation4], 1 }

</bundles_post_ra>
